<compile_context>
chip_gen: v6e
topology: v6e:2x2x1
jax: 0.10.0
libtpu: 0.0.40
codegen_flags: <defaults>
</compile_context>

<pallas_src>
import jax
import jax.numpy as jnp
from jax.experimental import pallas as pl
from jax.experimental.pallas import tpu as pltpu

BN_EPS = 1e-5
LANE = 128


def _round_up(n, m):
    return ((n + m - 1) // m) * m


def _make_critic_kernel(num_layers, out_widths):
    """Kernel for `num_layers` (Linear[no bias] -> BN) blocks; ReLU between
    blocks, tanh after the last (ToyCritic: last ReLU deleted, tanh applied)."""

    def kernel(*refs):
        # refs = x, w_0..w_{L-1} (each (in_pad, out_pad)), gb (2L, P), out
        x_ref = refs[0]
        w_refs = refs[1:1 + num_layers]
        gb_ref = refs[1 + num_layers]
        out_ref = refs[2 + num_layers]

        h = x_ref[...]
        for layer in range(num_layers):
            width = out_widths[layer]                       # static python int
            h = jnp.dot(h, w_refs[layer][...],
                        preferred_element_type=jnp.float32)

            # Training-mode BatchNorm1d (biased batch variance), folded into a
            # single scale/shift elementwise pass.  Linear bias already dropped
            # (cancelled exactly by the mean subtraction).
            gamma = gb_ref[layer:layer + 1, :width]
            beta = gb_ref[num_layers + layer:num_layers + layer + 1, :width]
            mean = jnp.mean(h, axis=0, keepdims=True)
            msq = jnp.mean(h * h, axis=0, keepdims=True)
            var = jnp.maximum(msq - mean * mean, 0.0)
            scale = gamma * jax.lax.rsqrt(var + BN_EPS)
            shift = beta - mean * scale
            h = h * scale + shift

            if layer < num_layers - 1:
                h = jnp.maximum(h, 0.0)                     # ReLU (hidden blocks)
            else:
                h = jnp.tanh(h)                             # ToyCritic output
        out_ref[...] = h.astype(out_ref.dtype)

    return kernel


def prepare_toy_critic_params(params):
    """One-time parameter conversion (do NOT redo per call):
      - transpose Linear weights to (in, out) and zero-pad out-dims to x128,
      - drop Linear biases (exactly cancelled by training-mode BN),
      - pack all gamma/beta rows into a single (2L, P) array (betas padded 0
        so padded feature columns stay exactly zero)."""
    num_layers = len(params)
    out_dims = [int(w.shape[0]) for (w, _, _, _) in params]
    out_pads = [_round_up(d, LANE) for d in out_dims]
    in_dims = [int(params[0][0].shape[1])] + out_pads[:-1]
    pmax = max(out_pads)

    weights = []
    gb = jnp.zeros((2 * num_layers, pmax), jnp.float32)
    for i, (w, _bias_dropped, gamma, beta) in enumerate(params):
        w = jnp.asarray(w, jnp.float32)                     # (out, in)
        wt = jnp.zeros((in_dims[i], out_pads[i]), jnp.float32)
        wt = wt.at[: w.shape[1], : w.shape[0]].set(w.T)     # (in_pad, out_pad)
        weights.append(wt)
        gb = gb.at[i, : out_dims[i]].set(jnp.asarray(gamma, jnp.float32))
        gb = gb.at[num_layers + i, : out_dims[i]].set(jnp.asarray(beta, jnp.float32))

    return {
        "weights": tuple(weights),
        "gb": gb,
        "out_pads": tuple(out_pads),
        "output_dim": out_dims[-1],
    }


def toy_critic_forward(x, prepared):
    """x: (B, ...) -> (B, output_dim) float32.  `prepared` from prepare_toy_critic_params."""
    batch = int(x.shape[0])
    x2d = x.reshape(batch, -1).astype(jnp.float32)

    weights = prepared["weights"]
    gb = prepared["gb"]
    out_pads = prepared["out_pads"]
    num_layers = len(weights)

    # Advisory cost estimate so XLA schedules correctly around the custom call.
    in_dims = [int(x2d.shape[1])] + list(out_pads[:-1])
    flops = sum(2 * batch * k + 8 * batch for k in (0,))  # placeholder, replaced below
    flops = sum(2 * batch * k * n + 8 * batch * n for k, n in zip(in_dims, out_pads))
    transcendentals = sum(out_pads) + batch * out_pads[-1]      # rsqrt per feat + tanh
    bytes_accessed = 4 * (x2d.size + sum(int(w.size) for w in weights)
                          + int(gb.size) + batch * out_pads[-1])

    vmem = pl.BlockSpec(memory_space=pltpu.MemorySpace.VMEM)
    out = pl.pallas_call(
        _make_critic_kernel(num_layers, out_pads),
        out_shape=jax.ShapeDtypeStruct((batch, out_pads[-1]), jnp.float32),
        in_specs=[vmem] * (num_layers + 2),
        out_specs=vmem,
        cost_estimate=pl.CostEstimate(flops=flops,
                                      transcendentals=transcendentals,
                                      bytes_accessed=bytes_accessed),
        # Fully-resident (gridless) design: explicit VMEM budget, safe on
        # v5e/v6e (128 MiB) and v7x (64 MiB physical).
        compiler_params=pltpu.CompilerParams(vmem_limit_bytes=32 * 1024 * 1024),
    )(x2d, *weights, gb)

    # Lane-dense (B, 128) kernel output; real column(s) are the leading ones.
    return out[:, : prepared["output_dim"]]


def _reference_forward(x, params):
    """Pure-JAX reference with the *full* PyTorch semantics (including the
    Linear bias) to verify that dropping the bias in the kernel is exact."""
    h = x.reshape(x.shape[0], -1).astype(jnp.float32)
    n = len(params)
    for i, (w, b, g, be) in enumerate(params):
        h = h @ jnp.asarray(w, jnp.float32).T + jnp.asarray(b, jnp.float32)
        mean = h.mean(axis=0, keepdims=True)
        var = ((h - mean) ** 2).mean(axis=0, keepdims=True)
        h = (h - mean) / jnp.sqrt(var + BN_EPS) * g + be
        h = jnp.maximum(h, 0.0) if i < n - 1 else jnp.tanh(h)
    return h


def init_toy_critic_params(key, data_dim, hiddens):
    """Synthetic parameters matching PyTorch shapes:
    Linear: W (out, in), b (out,);  BatchNorm1d: gamma (out,), beta (out,)."""
    dims_in = [data_dim] + list(hiddens)
    dims_out = list(hiddens) + [1]
    params = []
    for inp, outp in zip(dims_in, dims_out):
        key, kw, kb, kg, kbe = jax.random.split(key, 5)
        scale = 1.0 / jnp.sqrt(jnp.float32(inp))
        w = jax.random.uniform(kw, (outp, inp), jnp.float32, -scale, scale)
        b = jax.random.uniform(kb, (outp,), jnp.float32, -scale, scale)
        gamma = 1.0 + 0.1 * jax.random.normal(kg, (outp,), jnp.float32)
        beta = 0.1 * jax.random.normal(kbe, (outp,), jnp.float32)
        params.append((w, b, gamma, beta))
    return params


if __name__ == "__main__":
    key = jax.random.PRNGKey(0)
    k_x, k_p = jax.random.split(key)

    batch = 8                                   # multiple of 8 sublanes; real rows only (BN stats)
    x = jax.random.normal(k_x, (batch, 4, 4, 4), jnp.float32)   # flattened -> data_dim = 64
    data_dim = 4 * 4 * 4
    hiddens = [32, 32]

    params = init_toy_critic_params(k_p, data_dim, hiddens)
    prepared = prepare_toy_critic_params(params)        # one-time layout/pack/pad

    out = toy_critic_forward(x, prepared)
    out = jax.block_until_ready(out)

    ref = _reference_forward(x, params)
    assert out.shape == (batch, 1), out.shape
    assert jnp.allclose(out, ref, atol=1e-4, rtol=1e-4), (
        f"max abs err {jnp.max(jnp.abs(out - ref))}"
    )
    print("KERNEL_OK")
</pallas_src>

<mosaic_0001>
module attributes {stable_mosaic.version = 11 : i64} {
  func.func @kernel(%arg0: memref<8x64xf32, #tpu.memory_space<vmem>>, %arg1: memref<64x128xf32, #tpu.memory_space<vmem>>, %arg2: memref<128x128xf32, #tpu.memory_space<vmem>>, %arg3: memref<128x128xf32, #tpu.memory_space<vmem>>, %arg4: memref<6x128xf32, #tpu.memory_space<vmem>>, %arg5: memref<8x128xf32, #tpu.memory_space<vmem>>) attributes {dimension_semantics = [], scalar_prefetch = 0 : i64, scratch_operands = 0 : i64, tpu.core_type = #tpu.core_type<tc>} {
    %c0 = arith.constant 0 : index
    %c0_0 = arith.constant 0 : index
    %0 = vector.load %arg0[%c0, %c0_0] : memref<8x64xf32, #tpu.memory_space<vmem>>, vector<8x64xf32>
    %c0_1 = arith.constant 0 : index
    %c0_2 = arith.constant 0 : index
    %1 = vector.load %arg1[%c0_1, %c0_2] : memref<64x128xf32, #tpu.memory_space<vmem>>, vector<64x128xf32>
    %cst = arith.constant dense<0.000000e+00> : vector<8x128xf32>
    %2 = tpu.matmul %0, %1, %cst {dimension_numbers = #tpu.dot_dimension_numbers<[1], [0], [0], [1], [0, 0, 1, 1], [], []>} : vector<8x64xf32>, vector<64x128xf32>, vector<8x128xf32> -> vector<8x128xf32>
    %c0_3 = arith.constant 0 : index
    %c0_4 = arith.constant 0 : index
    %3 = vector.load %arg4[%c0_3, %c0_4] : memref<6x128xf32, #tpu.memory_space<vmem>>, vector<1x128xf32>
    %c3 = arith.constant 3 : index
    %c0_5 = arith.constant 0 : index
    %4 = vector.load %arg4[%c3, %c0_5] : memref<6x128xf32, #tpu.memory_space<vmem>>, vector<1x128xf32>
    %cst_6 = arith.constant dense<0.000000e+00> : vector<128xf32>
    %5 = vector.multi_reduction <add>, %2, %cst_6 [0] : vector<8x128xf32> to vector<128xf32>
    %6 = vector.shape_cast %5 : vector<128xf32> to vector<1x128xf32>
    %cst_7 = arith.constant 8.000000e+00 : f32
    %7 = vector.broadcast %cst_7 : f32 to vector<1x128xf32>
    %8 = arith.divf %6, %7 : vector<1x128xf32>
    %9 = arith.mulf %2, %2 : vector<8x128xf32>
    %cst_8 = arith.constant dense<0.000000e+00> : vector<128xf32>
    %10 = vector.multi_reduction <add>, %9, %cst_8 [0] : vector<8x128xf32> to vector<128xf32>
    %11 = vector.shape_cast %10 : vector<128xf32> to vector<1x128xf32>
    %cst_9 = arith.constant 8.000000e+00 : f32
    %12 = vector.broadcast %cst_9 : f32 to vector<1x128xf32>
    %13 = arith.divf %11, %12 : vector<1x128xf32>
    %14 = arith.mulf %8, %8 : vector<1x128xf32>
    %15 = arith.subf %13, %14 : vector<1x128xf32>
    %cst_10 = arith.constant 0.000000e+00 : f32
    %16 = vector.broadcast %cst_10 : f32 to vector<1x128xf32>
    %17 = arith.maximumf %15, %16 : vector<1x128xf32>
    %cst_11 = arith.constant 9.99999974E-6 : f32
    %18 = vector.broadcast %cst_11 : f32 to vector<1x128xf32>
    %19 = arith.addf %17, %18 : vector<1x128xf32>
    %20 = math.rsqrt %19 : vector<1x128xf32>
    %21 = arith.mulf %3, %20 : vector<1x128xf32>
    %22 = arith.mulf %8, %21 : vector<1x128xf32>
    %23 = arith.subf %4, %22 : vector<1x128xf32>
    %24 = vector.broadcast %21 : vector<1x128xf32> to vector<8x128xf32>
    %25 = arith.mulf %2, %24 : vector<8x128xf32>
    %26 = vector.broadcast %23 : vector<1x128xf32> to vector<8x128xf32>
    %27 = arith.addf %25, %26 : vector<8x128xf32>
    %cst_12 = arith.constant 0.000000e+00 : f32
    %28 = vector.broadcast %cst_12 : f32 to vector<8x128xf32>
    %29 = arith.maximumf %27, %28 : vector<8x128xf32>
    %c0_13 = arith.constant 0 : index
    %c0_14 = arith.constant 0 : index
    %30 = vector.load %arg2[%c0_13, %c0_14] : memref<128x128xf32, #tpu.memory_space<vmem>>, vector<128x128xf32>
    %cst_15 = arith.constant dense<0.000000e+00> : vector<8x128xf32>
    %31 = tpu.matmul %29, %30, %cst_15 {dimension_numbers = #tpu.dot_dimension_numbers<[1], [0], [0], [1], [0, 0, 1, 1], [], []>} : vector<8x128xf32>, vector<128x128xf32>, vector<8x128xf32> -> vector<8x128xf32>
    %c1 = arith.constant 1 : index
    %c0_16 = arith.constant 0 : index
    %32 = vector.load %arg4[%c1, %c0_16] : memref<6x128xf32, #tpu.memory_space<vmem>>, vector<1x128xf32>
    %c4 = arith.constant 4 : index
    %c0_17 = arith.constant 0 : index
    %33 = vector.load %arg4[%c4, %c0_17] : memref<6x128xf32, #tpu.memory_space<vmem>>, vector<1x128xf32>
    %cst_18 = arith.constant dense<0.000000e+00> : vector<128xf32>
    %34 = vector.multi_reduction <add>, %31, %cst_18 [0] : vector<8x128xf32> to vector<128xf32>
    %35 = vector.shape_cast %34 : vector<128xf32> to vector<1x128xf32>
    %cst_19 = arith.constant 8.000000e+00 : f32
    %36 = vector.broadcast %cst_19 : f32 to vector<1x128xf32>
    %37 = arith.divf %35, %36 : vector<1x128xf32>
    %38 = arith.mulf %31, %31 : vector<8x128xf32>
    %cst_20 = arith.constant dense<0.000000e+00> : vector<128xf32>
    %39 = vector.multi_reduction <add>, %38, %cst_20 [0] : vector<8x128xf32> to vector<128xf32>
    %40 = vector.shape_cast %39 : vector<128xf32> to vector<1x128xf32>
    %cst_21 = arith.constant 8.000000e+00 : f32
    %41 = vector.broadcast %cst_21 : f32 to vector<1x128xf32>
    %42 = arith.divf %40, %41 : vector<1x128xf32>
    %43 = arith.mulf %37, %37 : vector<1x128xf32>
    %44 = arith.subf %42, %43 : vector<1x128xf32>
    %cst_22 = arith.constant 0.000000e+00 : f32
    %45 = vector.broadcast %cst_22 : f32 to vector<1x128xf32>
    %46 = arith.maximumf %44, %45 : vector<1x128xf32>
    %cst_23 = arith.constant 9.99999974E-6 : f32
    %47 = vector.broadcast %cst_23 : f32 to vector<1x128xf32>
    %48 = arith.addf %46, %47 : vector<1x128xf32>
    %49 = math.rsqrt %48 : vector<1x128xf32>
    %50 = arith.mulf %32, %49 : vector<1x128xf32>
    %51 = arith.mulf %37, %50 : vector<1x128xf32>
    %52 = arith.subf %33, %51 : vector<1x128xf32>
    %53 = vector.broadcast %50 : vector<1x128xf32> to vector<8x128xf32>
    %54 = arith.mulf %31, %53 : vector<8x128xf32>
    %55 = vector.broadcast %52 : vector<1x128xf32> to vector<8x128xf32>
    %56 = arith.addf %54, %55 : vector<8x128xf32>
    %cst_24 = arith.constant 0.000000e+00 : f32
    %57 = vector.broadcast %cst_24 : f32 to vector<8x128xf32>
    %58 = arith.maximumf %56, %57 : vector<8x128xf32>
    %c0_25 = arith.constant 0 : index
    %c0_26 = arith.constant 0 : index
    %59 = vector.load %arg3[%c0_25, %c0_26] : memref<128x128xf32, #tpu.memory_space<vmem>>, vector<128x128xf32>
    %cst_27 = arith.constant dense<0.000000e+00> : vector<8x128xf32>
    %60 = tpu.matmul %58, %59, %cst_27 {dimension_numbers = #tpu.dot_dimension_numbers<[1], [0], [0], [1], [0, 0, 1, 1], [], []>} : vector<8x128xf32>, vector<128x128xf32>, vector<8x128xf32> -> vector<8x128xf32>
    %c2 = arith.constant 2 : index
    %c0_28 = arith.constant 0 : index
    %61 = vector.load %arg4[%c2, %c0_28] : memref<6x128xf32, #tpu.memory_space<vmem>>, vector<1x128xf32>
    %c5 = arith.constant 5 : index
    %c0_29 = arith.constant 0 : index
    %62 = vector.load %arg4[%c5, %c0_29] : memref<6x128xf32, #tpu.memory_space<vmem>>, vector<1x128xf32>
    %cst_30 = arith.constant dense<0.000000e+00> : vector<128xf32>
    %63 = vector.multi_reduction <add>, %60, %cst_30 [0] : vector<8x128xf32> to vector<128xf32>
    %64 = vector.shape_cast %63 : vector<128xf32> to vector<1x128xf32>
    %cst_31 = arith.constant 8.000000e+00 : f32
    %65 = vector.broadcast %cst_31 : f32 to vector<1x128xf32>
    %66 = arith.divf %64, %65 : vector<1x128xf32>
    %67 = arith.mulf %60, %60 : vector<8x128xf32>
    %cst_32 = arith.constant dense<0.000000e+00> : vector<128xf32>
    %68 = vector.multi_reduction <add>, %67, %cst_32 [0] : vector<8x128xf32> to vector<128xf32>
    %69 = vector.shape_cast %68 : vector<128xf32> to vector<1x128xf32>
    %cst_33 = arith.constant 8.000000e+00 : f32
    %70 = vector.broadcast %cst_33 : f32 to vector<1x128xf32>
    %71 = arith.divf %69, %70 : vector<1x128xf32>
    %72 = arith.mulf %66, %66 : vector<1x128xf32>
    %73 = arith.subf %71, %72 : vector<1x128xf32>
    %cst_34 = arith.constant 0.000000e+00 : f32
    %74 = vector.broadcast %cst_34 : f32 to vector<1x128xf32>
    %75 = arith.maximumf %73, %74 : vector<1x128xf32>
    %cst_35 = arith.constant 9.99999974E-6 : f32
    %76 = vector.broadcast %cst_35 : f32 to vector<1x128xf32>
    %77 = arith.addf %75, %76 : vector<1x128xf32>
    %78 = math.rsqrt %77 : vector<1x128xf32>
    %79 = arith.mulf %61, %78 : vector<1x128xf32>
    %80 = arith.mulf %66, %79 : vector<1x128xf32>
    %81 = arith.subf %62, %80 : vector<1x128xf32>
    %82 = vector.broadcast %79 : vector<1x128xf32> to vector<8x128xf32>
    %83 = arith.mulf %60, %82 : vector<8x128xf32>
    %84 = vector.broadcast %81 : vector<1x128xf32> to vector<8x128xf32>
    %85 = arith.addf %83, %84 : vector<8x128xf32>
    %86 = math.tanh %85 : vector<8x128xf32>
    %c0_36 = arith.constant 0 : index
    %c0_37 = arith.constant 0 : index
    %87 = vector.load %arg5[%c0_36, %c0_37] : memref<8x128xf32, #tpu.memory_space<vmem>>, vector<8x128xf32>
    tpu.vector_store %arg5[%c0_36, %c0_37], %86 {strides = array<i32>} : memref<8x128xf32, #tpu.memory_space<vmem>>, vector<8x128xf32>,
    return
  }
}

</mosaic_0001>

<bundles_post_ra>
// kernel: tpu_custom_call.1
= control target key start
LH: loop header
LB: loop body
LE: loop exit
PB: predicated region body
PF: predicated region fallthrough
CT: control target
= control target key end

     0   :  { %10 = vsyncpa [#allocation3], 0  ;;  %s867_s0 = inlined_call_operand.hbm [shape: f32[8,64], index: 0, kind: input, shape index: {}]   ;;  %s868_s1 = inlined_call_operand.hbm [shape: f32[64,128], index: 1, kind: input, shape index: {}]   ;;  %s869_s2 = inlined_call_operand.hbm [shape: f32[128,128], index: 2, kind: input, shape index: {}]   ;;  %s870_s3 = inlined_call_operand.hbm [shape: f32[128,128], index: 3, kind: input, shape index: {}]   ;;  %s871_s4 = inlined_call_operand.hbm [shape: f32[6,128], index: 4, kind: input, shape index: {}]   ;;  %s872_s5 = inlined_call_operand.hbm [shape: f32[8,128], index: 5, kind: output, shape index: {}]  }
   0x1   :  { %11 = vsyncpa [#allocation6], 0 }
   0x2   :  { %12 = vsyncpa [#allocation9], 0 }
   0x3   :  { %13 = vsyncpa [#allocation4], 0  ;;  %s746_s18 = smov [#allocation5]  }
   0x4   :  { %s29_s19 = sshll.u32 %s746_s18, 4  ;;  %s30_s19 = int_to_ptr.vmem [resolvable:$true] %s29_s19 }
   0x5   :  { %s626_s20 = scalar_lea.vmem %s30_s19, 1024  ;;  %p631_p1 = scmp.lt.s32.totalorder %s30_s19, %s30_s19 }
   0x6   :  { %p627_p0 = scmp.ne.s32.totalorder %s30_s19, %s626_s20  ;;  %p632_p2 = scmp.lt.s32.totalorder %s626_s20, %s626_s20 }
   0x8   :  { %p633_p3 = por %p632_p2, %p631_p1 }
   0xa   :  { %p634_p4 = pnand %p633_p3, %p627_p0 }
   0xc   :  { %637 = shalt.err (!%p634_p4)
}
   0xd   :  { %s747_s21 = smov 128   ;;  %s748_s22 = smov 8  }
   0xe   :  { %35 = dma.hbm_to_vmem [thread:$0]  %s868_s1, 1024, %s30_s19, [#allocation6], %s747_s21, %s747_s21, %s748_s22  }
   0xf   :  { %s749_s25 = smov [#allocation8]   ;;  %s750_s27 = smov [#allocation2]  }
  0x10   :  { %s53_s26 = sshll.u32 %s749_s25, 4  ;;  %s20_s28 = sshll.u32 %s750_s27, 4  ;;  %s54_s26 = int_to_ptr.vmem [resolvable:$true] %s53_s26  ;;  %s21_s28 = int_to_ptr.vmem [resolvable:$true] %s20_s28 }
  0x11   :  { %s646_s29 = scalar_lea.vmem %s54_s26, 2048  ;;  %p651_p6 = scmp.lt.s32.totalorder %s54_s26, %s54_s26 }
  0x12   :  { %p647_p5 = scmp.ne.s32.totalorder %s54_s26, %s646_s29  ;;  %p652_p7 = scmp.lt.s32.totalorder %s646_s29, %s646_s29 }
  0x14   :  { %p653_p8 = por %p652_p7, %p651_p6 }
  0x16   :  { %p654_p9 = pnand %p653_p8, %p647_p5 }
  0x18   :  { %657 = shalt.err (!%p654_p9)
}
  0x19   :  { %59 = dma.hbm_to_vmem [thread:$0]  %s870_s3, 2048, %s54_s26, [#allocation9], %s747_s21, %s747_s21, %s748_s22  }
  0x1a   :  { %s666_s1 = scalar_lea.vmem %s21_s28, 128  ;;  %p671_p11 = scmp.lt.s32.totalorder %s21_s28, %s21_s28 }
  0x1b   :  { %p667_p10 = scmp.ne.s32.totalorder %s21_s28, %s666_s1  ;;  %p672_p12 = scmp.lt.s32.totalorder %s666_s1, %s666_s1 }
  0x1d   :  { %p673_p13 = por %p672_p12, %p671_p11 }
  0x1f   :  { %p674_p0 = pnand %p673_p13, %p667_p10 }
  0x21   :  { %677 = shalt.err (!%p674_p0)
}
  0x22   :  { %23 = dma.hbm_to_vmem [thread:$0]  %s867_s0, 128, %s21_s28, [#allocation3]  }
  0x23   :  { %s751_s9 = smov [#allocation7]   ;;  %s752_s11 = smov [#allocation10]  }
  0x24   :  { %s41_s10 = sshll.u32 %s751_s9, 4  ;;  %s66_s12 = sshll.u32 %s752_s11, 4  ;;  %s42_s10 = int_to_ptr.vmem [resolvable:$true] %s41_s10  ;;  %s67_s12 = int_to_ptr.vmem [resolvable:$true] %s66_s12 }
  0x25   :  { %s686_s13 = scalar_lea.vmem %s42_s10, 2048  ;;  %p691_p2 = scmp.lt.s32.totalorder %s42_s10, %s42_s10 }
  0x26   :  { %p687_p1 = scmp.ne.s32.totalorder %s42_s10, %s686_s13  ;;  %p692_p3 = scmp.lt.s32.totalorder %s686_s13, %s686_s13 }
  0x28   :  { %p693_p4 = por %p692_p3, %p691_p2 }
  0x2a   :  { %p694_p5 = pnand %p693_p4, %p687_p1 }
  0x2c   :  { %697 = shalt.err (!%p694_p5)
}
  0x2d   :  { %47 = dma.hbm_to_vmem [thread:$0]  %s869_s2, 2048, %s42_s10, [#allocation6], %s747_s21, %s747_s21, %s748_s22  }
  0x2e   :  { %s706_s0 = scalar_lea.vmem %s67_s12, 128  ;;  %p711_p7 = scmp.lt.s32.totalorder %s67_s12, %s67_s12 }
  0x2f   :  { %p707_p6 = scmp.ne.s32.totalorder %s67_s12, %s706_s0  ;;  %p712_p8 = scmp.lt.s32.totalorder %s706_s0, %s706_s0 }
  0x31   :  { %p713_p9 = por %p712_p8, %p711_p7 }
  0x33   :  { %p714_p10 = pnand %p713_p9, %p707_p6 }
  0x35   :  { %717 = shalt.err (!%p714_p10)
}
  0x36   :  { %69 = dma.hbm_to_vmem [thread:$0]  %s871_s4, 128, %s67_s12, [#allocation9]  }
  0x37   :  { %738 = dma.done.wait [#allocation3], 128  }
  0x38   :  { %739 = vsyncadd [#allocation3], 4294967168 }
  0x39   :  { %740 = dma.done.wait [#allocation6], 3072  }
  0x3a   :  { %741 = vsyncadd [#allocation6], 4294964224 }
  0x3b   :  { %742 = dma.done.wait [#allocation9], 2176  }
  0x3c   :  { %743 = vsyncadd [#allocation9], 4294965120  ;;  %v753_v0 = vmov 0.0   ;;  %vm754_vm0 = vmmov 0   ;;  %v93_v1 = vld [vmem:[#allocation5 + $0x38] sm:$0xff]  ;;  %v92_v2 = vld [vmem:[#allocation5 + $0x30] sm:$0xff]  ;;  %v194_v47 = vlaneseq }
  0x3d   :  { %511 = vmatprep.subr.mxu0 %v753_v0  ;;  %527 = vmatprep.mubr.msk.f32.mxu0 %vm754_vm0, %v753_v0  ;;  %v91_v3 = vld [vmem:[#allocation5 + $0x28] sm:$0xff]  ;;  %v90_v4 = vld [vmem:[#allocation5 + $0x20] sm:$0xff]  ;;  %v89_v5 = vld [vmem:[#allocation5 + $0x18] sm:$0xff]  ;;  %vm94_vm1 = vcmask 523264   ;;  %s755_s2 = smov [#allocation11]  }
  0x3e   :  { %530 = vmatprep.subr.mxu1 %v753_v0  ;;  %562 = vmatprep.mubr.msk.f32.mxu1 %vm754_vm0, %v753_v0  ;;  %v88_v6 = vld [vmem:[#allocation5 + $0x10] sm:$0xff]  ;;  %v87_v7 = vld [vmem:[#allocation5 + $0x8] sm:$0xff]  ;;  %v86_v8 = vld [vmem:[#allocation5] sm:$0xff]  ;;  %v195_v48 = vshrl.u32 %v194_v47, 7  ;;  %s456_s4 = sshll.u32 %s755_s2, 4  ;;  %s457_s4 = int_to_ptr.vmem [resolvable:$true] %s456_s4 }
  0x3f   :  { %512 = vmatpush3.msra.mxu0 %v93_v1  ;;  %v85_v9 = vld [vmem:[#allocation2] sm:$0xff]  ;;  %v219_v11 = vld [vmem:[#allocation7 + $0x70] sm:$0xff]  ;;  %v218_v12 = vld [vmem:[#allocation7 + $0x68] sm:$0xff]  ;;  %s718_s17 = scalar_lea.vmem %s457_s4, 128  ;;  %p723_p12 = scmp.lt.s32.totalorder %s457_s4, %s457_s4 }
  0x40   :  { %513 = vmatprep.subr.mxu0 %v753_v0  ;;  %v220_v10 = vld [vmem:[#allocation7 + $0x78] sm:$0xff]  ;;  %v217_v13 = vld [vmem:[#allocation7 + $0x60] sm:$0xff]  ;;  %v215_v15 = vld [vmem:[#allocation7 + $0x50] sm:$0xff]  ;;  %v841_v50 = vsub.s32 0, %v195_v48  ;;  %p719_p11 = scmp.ne.s32.totalorder %s457_s4, %s718_s17  ;;  %p724_p13 = scmp.lt.s32.totalorder %s718_s17, %s718_s17 }
  0x41   :  { %514 = vmatpush3.msra.mxu0 %v92_v2  ;;  %531 = vmatpush3.msra.mxu1 %v220_v10  ;;  %v216_v14 = vld [vmem:[#allocation7 + $0x58] sm:$0xff]  ;;  %v214_v16 = vld [vmem:[#allocation7 + $0x48] sm:$0xff]  ;;  %v213_v17 = vld [vmem:[#allocation7 + $0x40] sm:$0xff] }
  0x42   :  { %515 = vmatprep.subr.mxu0 %v753_v0  ;;  %532 = vmatprep.subr.mxu1 %v753_v0  ;;  %v212_v18 = vld [vmem:[#allocation7 + $0x38] sm:$0xff]  ;;  %v211_v19 = vld [vmem:[#allocation7 + $0x30] sm:$0xff]  ;;  %v210_v20 = vld [vmem:[#allocation7 + $0x28] sm:$0xff]  ;;  %p725_p0 = por %p724_p13, %p723_p12 }
  0x43   :  { %516 = vmatpush3.msra.mxu0 %v91_v3  ;;  %533 = vmatpush3.msra.mxu1 %v219_v11  ;;  %v209_v21 = vld [vmem:[#allocation7 + $0x20] sm:$0xff]  ;;  %v208_v22 = vld [vmem:[#allocation7 + $0x18] sm:$0xff]  ;;  %v207_v23 = vld [vmem:[#allocation7 + $0x10] sm:$0xff] }
  0x44   :  { %517 = vmatprep.subr.mxu0 %v753_v0  ;;  %534 = vmatprep.subr.mxu1 %v753_v0  ;;  %v206_v24 = vld [vmem:[#allocation7 + $0x8] sm:$0xff]  ;;  %v205_v25 = vld [vmem:[#allocation7] sm:$0xff]  ;;  %v342_v61 = vld [vmem:[#allocation8 + $0x78] sm:$0xff]  ;;  %p726_p1 = pnand %p725_p0, %p719_p11 }
  0x45   :  { %518 = vmatpush3.msra.mxu0 %v90_v4  ;;  %535 = vmatpush3.msra.mxu1 %v218_v12  ;;  %v168_v49 = vld [vmem:[#allocation10] sm:$0x1]  ;;  %v169_v53 = vld [vmem:[#allocation10 + $0x3] sm:$0x1]  ;;  %v341_v62 = vld [vmem:[#allocation8 + $0x70] sm:$0xff] }
  0x46   :  { %519 = vmatprep.subr.mxu0 %v753_v0  ;;  %536 = vmatprep.subr.mxu1 %v753_v0  ;;  %v340_v63 = vld [vmem:[#allocation8 + $0x68] sm:$0xff]  ;;  %v339_v1 = vld [vmem:[#allocation8 + $0x60] sm:$0xff]  ;;  %v338_v2 = vld [vmem:[#allocation8 + $0x58] sm:$0xff] }
  0x47   :  { %520 = vmatpush3.msra.mxu0 %v89_v5  ;;  %537 = vmatpush3.msra.mxu1 %v217_v13  ;;  %v337_v3 = vld [vmem:[#allocation8 + $0x50] sm:$0xff]  ;;  %v336_v4 = vld [vmem:[#allocation8 + $0x48] sm:$0xff]  ;;  %v335_v5 = vld [vmem:[#allocation8 + $0x40] sm:$0xff] }
  0x48   :  { %521 = vmatprep.subr.mxu0 %v753_v0  ;;  %538 = vmatprep.subr.mxu1 %v753_v0  ;;  %v330_v10 = vld [vmem:[#allocation8 + $0x18] sm:$0xff]  ;;  %v329_v11 = vld [vmem:[#allocation8 + $0x10] sm:$0xff]  ;;  %v328_v12 = vld [vmem:[#allocation8 + $0x8] sm:$0xff] }
  0x49   :  { %522 = vmatpush3.msra.mxu0 %v88_v6  ;;  %539 = vmatpush3.msra.mxu1 %v216_v14  ;;  %v334_v6 = vld [vmem:[#allocation8 + $0x38] sm:$0xff]  ;;  %v327_v13 = vld [vmem:[#allocation8] sm:$0xff] }
  0x4a   :  { %523 = vmatprep.subr.mxu0 %v753_v0  ;;  %540 = vmatprep.subr.mxu1 %v753_v0 }
  0x4b   :  { %524 = vmatpush3.msra.mxu0 %v87_v7  ;;  %541 = vmatpush3.msra.mxu1 %v215_v15  ;;  %v333_v7 = vld [vmem:[#allocation8 + $0x30] sm:$0xff] }
  0x4c   :  { %525 = vmatprep.subr.mxu0 %v753_v0  ;;  %542 = vmatprep.subr.mxu1 %v753_v0 }
  0x4d   :  { %526 = vmatpush3.msra.mxu0 %v86_v8  ;;  %543 = vmatpush3.msra.mxu1 %v214_v16  ;;  %v332_v8 = vld [vmem:[#allocation8 + $0x28] sm:$0xff] }
  0x4e   :  { %528 = vmatmul.mubr.msk.f32.vlgmr.msra.gmra.mxu0 %vm94_vm1, %v85_v9  ;;  %565 = vmatprep.subr.mxu0 %v753_v0  ;;  %v331_v9 = vld [vmem:[#allocation8 + $0x20] sm:$0xff] }
  0x4f   :  { %597 = vmatprep.mubr.msk.f32.mxu0 %vm754_vm0, %v753_v0  ;;  %544 = vmatprep.subr.mxu1 %v753_v0 }
  0x50   :  { %545 = vmatpush3.msra.mxu1 %v213_v17  ;;  %566 = vmatpush3.msra.mxu0 %v342_v61 }
  0x51   :  { %546 = vmatprep.subr.mxu1 %v753_v0  ;;  %567 = vmatprep.subr.mxu0 %v753_v0 }
  0x52   :  { %547 = vmatpush3.msra.mxu1 %v212_v18  ;;  %568 = vmatpush3.msra.mxu0 %v341_v62 }
  0x53   :  { %548 = vmatprep.subr.mxu1 %v753_v0  ;;  %569 = vmatprep.subr.mxu0 %v753_v0 }
  0x54   :  { %549 = vmatpush3.msra.mxu1 %v211_v19  ;;  %570 = vmatpush3.msra.mxu0 %v340_v63 }
  0x55   :  { %550 = vmatprep.subr.mxu1 %v753_v0  ;;  %571 = vmatprep.subr.mxu0 %v753_v0 }
  0x56   :  { %551 = vmatpush3.msra.mxu1 %v210_v20  ;;  %572 = vmatpush3.msra.mxu0 %v339_v1 }
  0x57   :  { %552 = vmatprep.subr.mxu1 %v753_v0  ;;  %573 = vmatprep.subr.mxu0 %v753_v0 }
  0x58   :  { %553 = vmatpush3.msra.mxu1 %v209_v21  ;;  %574 = vmatpush3.msra.mxu0 %v338_v2 }
  0x59   :  { %554 = vmatprep.subr.mxu1 %v753_v0  ;;  %575 = vmatprep.subr.mxu0 %v753_v0 }
  0x5a   :  { %555 = vmatpush3.msra.mxu1 %v208_v22  ;;  %576 = vmatpush3.msra.mxu0 %v337_v3 }
  0x5b   :  { %556 = vmatprep.subr.mxu1 %v753_v0  ;;  %577 = vmatprep.subr.mxu0 %v753_v0 }
  0x5c   :  { %557 = vmatpush3.msra.mxu1 %v207_v23  ;;  %578 = vmatpush3.msra.mxu0 %v336_v4  ;;  %v413_v4 = vld [vmem:[#allocation10 + $0x2] sm:$0x1] }
  0x5d   :  { %558 = vmatprep.subr.mxu1 %v753_v0  ;;  %579 = vmatprep.subr.mxu0 %v753_v0 }
  0x5e   :  { %559 = vmatpush3.msra.mxu1 %v206_v24  ;;  %580 = vmatpush3.msra.mxu0 %v335_v5 }
  0x5f   :  { %560 = vmatprep.subr.mxu1 %v753_v0  ;;  %581 = vmatprep.subr.mxu0 %v753_v0 }
  0x60   :  { %561 = vmatpush3.msra.mxu1 %v205_v25  ;;  %582 = vmatpush3.msra.mxu0 %v334_v6 }
  0x61   :  { %583 = vmatprep.subr.mxu0 %v753_v0 }
  0x62   :  { %584 = vmatpush3.msra.mxu0 %v333_v7  ;;  %v414_v7 = vld [vmem:[#allocation10 + $0x5] sm:$0x1] }
  0x63   :  { %585 = vmatprep.subr.mxu0 %v753_v0 }
  0x64   :  { %586 = vmatpush3.msra.mxu0 %v332_v8 }
  0x65   :  { %587 = vmatprep.subr.mxu0 %v753_v0 }
  0x66   :  { %588 = vmatpush3.msra.mxu0 %v331_v9 }
  0x67   :  { %589 = vmatprep.subr.mxu0 %v753_v0 }
  0x68   :  { %590 = vmatpush3.msra.mxu0 %v330_v10 }
  0x69   :  { %591 = vmatprep.subr.mxu0 %v753_v0 }
  0x6a   :  { %592 = vmatpush3.msra.mxu0 %v329_v11 }
  0x6b   :  { %593 = vmatprep.subr.mxu0 %v753_v0 }
  0x6c   :  { %594 = vmatpush3.msra.mxu0 %v328_v12 }
  0x6d   :  { %595 = vmatprep.subr.mxu0 %v753_v0 }
  0x6e   :  { %596 = vmatpush3.msra.mxu0 %v327_v13 }
 0x10e   :  { %v164_v26 = vpop.f32.mrf.mxu0 }
 0x10f   :  { %v170_v27 = vrot.slane %v164_v26, 4  ;;  %v178_v28 = vmul.f32 %v164_v26, %v164_v26 }
 0x110   :  { %v529_v29 = vpop.f32.mrf.mxu0 }
 0x111   :  { %v171_v30 = vadd.f32 %v170_v27, %v164_v26  ;;  %v179_v31 = vrot.slane %v178_v28, 4 }
 0x113   :  { %v172_v32 = vrot.slane %v171_v30, 2  ;;  %v180_v33 = vadd.f32 %v179_v31, %v178_v28 }
 0x115   :  { %v173_v34 = vadd.f32 %v172_v32, %v171_v30  ;;  %v181_v35 = vrot.slane %v180_v33, 2 }
 0x117   :  { %v174_v36 = vrot.slane %v173_v34, 1  ;;  %v182_v37 = vadd.f32 %v181_v35, %v180_v33 }
 0x119   :  { %v175_v38 = vadd.f32 %v174_v36, %v173_v34  ;;  %v183_v39 = vrot.slane %v182_v37, 1  ;;  %v291_v34 = vld [vmem:[#allocation10 + $0x1] sm:$0x1] }
 0x11b   :  { %v177_v40 = vmul.f32 0.125, %v175_v38  ;;  %v184_v41 = vadd.f32 %v183_v39, %v182_v37  ;;  %v292_v37 = vld [vmem:[#allocation10 + $0x4] sm:$0x1] }
 0x11d   :  { %v185_v42 = vmul.f32 0.125, %v184_v41  ;;  %v186_v43 = vmul.f32 %v177_v40, %v177_v40 }
 0x11f   :  { %v187_v44 = vsub.f32 %v185_v42, %v186_v43 }
 0x121   :  { %v188_v45 = vmax.f32 %v187_v44, 0.0 }
 0x123   :  { %v189_v46 = vadd.f32 1e-05, %v188_v45 }
 0x125   :  { %610 = vrsqrt.f32 %v189_v46 }
 0x132   :  { %v611_v51 = vpop.eup %610 }
 0x133   :  { %v191_v52 = vmul.f32 %v611_v51, %v168_v49 }
 0x135   :  { %v197_v54 = vrot.slane %v191_v52, %v841_v50  ;;  %v192_v55 = vmul.f32 %v191_v52, %v177_v40 }
 0x137   :  { %v193_v56 = vsub.f32 %v169_v53, %v192_v55  ;;  %v198_v57 = vmul.f32 %v197_v54, %v164_v26 }
 0x139   :  { %v202_v58 = vrot.slane %v193_v56, %v841_v50 }
 0x13b   :  { %v203_v59 = vadd.f32 %v202_v58, %v198_v57 }
 0x13d   :  { %v204_v60 = vmax.f32 %v203_v59, 0.0 }
 0x13f   :  { %563 = vmatmul.mubr.f32.vlgmr.msra.gmra.mxu1 %v204_v60 }
 0x1ff   :  { %v287_v14 = vpop.f32.mrf.mxu1 }
 0x200   :  { %v293_v15 = vrot.slane %v287_v14, 4  ;;  %v300_v16 = vmul.f32 %v287_v14, %v287_v14 }
 0x201   :  { %v564_v17 = vpop.f32.mrf.mxu1 }
 0x202   :  { %v294_v18 = vadd.f32 %v293_v15, %v287_v14  ;;  %v301_v19 = vrot.slane %v300_v16, 4 }
 0x204   :  { %v295_v20 = vrot.slane %v294_v18, 2  ;;  %v302_v21 = vadd.f32 %v301_v19, %v300_v16 }
 0x206   :  { %v296_v22 = vadd.f32 %v295_v20, %v294_v18  ;;  %v303_v23 = vrot.slane %v302_v21, 2 }
 0x208   :  { %v297_v24 = vrot.slane %v296_v22, 1  ;;  %v304_v25 = vadd.f32 %v303_v23, %v302_v21 }
 0x20a   :  { %v298_v26 = vadd.f32 %v297_v24, %v296_v22  ;;  %v305_v27 = vrot.slane %v304_v25, 1 }
 0x20c   :  { %v299_v28 = vmul.f32 0.125, %v298_v26  ;;  %v306_v29 = vadd.f32 %v305_v27, %v304_v25 }
 0x20e   :  { %v307_v30 = vmul.f32 0.125, %v306_v29  ;;  %v308_v31 = vmul.f32 %v299_v28, %v299_v28 }
 0x210   :  { %v309_v0 = vsub.f32 %v307_v30, %v308_v31 }
 0x212   :  { %v310_v32 = vmax.f32 %v309_v0, 0.0 }
 0x214   :  { %v311_v33 = vadd.f32 1e-05, %v310_v32 }
 0x216   :  { %612 = vrsqrt.f32 %v311_v33 }
 0x223   :  { %v613_v35 = vpop.eup %612 }
 0x224   :  { %v313_v36 = vmul.f32 %v613_v35, %v291_v34 }
 0x226   :  { %v314_v38 = vmul.f32 %v313_v36, %v299_v28  ;;  %v319_v39 = vrot.slane %v313_v36, %v841_v50 }
 0x228   :  { %v315_v40 = vsub.f32 %v292_v37, %v314_v38  ;;  %v320_v41 = vmul.f32 %v319_v39, %v287_v14 }
 0x22a   :  { %v324_v42 = vrot.slane %v315_v40, %v841_v50 }
 0x22c   :  { %v325_v43 = vadd.f32 %v324_v42, %v320_v41 }
 0x22e   :  { %v326_v44 = vmax.f32 %v325_v43, 0.0 }
 0x230   :  { %598 = vmatmul.mubr.f32.vlgmr.msra.gmra.mxu0 %v326_v44 }
 0x2f0   :  { %v409_v45 = vpop.f32.mrf.mxu0 }
 0x2f1   :  { %v415_v46 = vrot.slane %v409_v45, 4  ;;  %v422_v47 = vmul.f32 %v409_v45, %v409_v45 }
 0x2f2   :  { %v599_v48 = vpop.f32.mrf.mxu0 }
 0x2f3   :  { %v416_v49 = vadd.f32 %v415_v46, %v409_v45  ;;  %v423_v51 = vrot.slane %v422_v47, 4 }
 0x2f5   :  { %v417_v52 = vrot.slane %v416_v49, 2  ;;  %v424_v53 = vadd.f32 %v423_v51, %v422_v47 }
 0x2f7   :  { %v418_v54 = vadd.f32 %v417_v52, %v416_v49  ;;  %v425_v55 = vrot.slane %v424_v53, 2 }
 0x2f9   :  { %v419_v56 = vrot.slane %v418_v54, 1  ;;  %v426_v57 = vadd.f32 %v425_v55, %v424_v53 }
 0x2fb   :  { %v420_v58 = vadd.f32 %v419_v56, %v418_v54  ;;  %v427_v59 = vrot.slane %v426_v57, 1 }
 0x2fd   :  { %v421_v60 = vmul.f32 0.125, %v420_v58  ;;  %v428_v61 = vadd.f32 %v427_v59, %v426_v57 }
 0x2ff   :  { %v429_v62 = vmul.f32 0.125, %v428_v61  ;;  %v430_v63 = vmul.f32 %v421_v60, %v421_v60 }
 0x301   :  { %v431_v1 = vsub.f32 %v429_v62, %v430_v63 }
 0x303   :  { %v432_v2 = vmax.f32 %v431_v1, 0.0 }
 0x305   :  { %v433_v3 = vadd.f32 1e-05, %v432_v2 }
 0x307   :  { %614 = vrsqrt.f32 %v433_v3 }
 0x314   :  { %v615_v5 = vpop.eup %614 }
 0x315   :  { %v435_v6 = vmul.f32 %v615_v5, %v413_v4 }
 0x317   :  { %v436_v8 = vmul.f32 %v435_v6, %v421_v60  ;;  %v441_v9 = vrot.slane %v435_v6, %v841_v50 }
 0x319   :  { %v437_v10 = vsub.f32 %v414_v7, %v436_v8  ;;  %v442_v11 = vmul.f32 %v441_v9, %v409_v45 }
 0x31b   :  { %v446_v12 = vrot.slane %v437_v10, %v841_v50 }
 0x31d   :  { %v447_v13 = vadd.f32 %v446_v12, %v442_v11 }
 0x31f   :  { %616 = vtanh.f32 %v447_v13 }
 0x32c   :  { %v617_v14 = vpop.eup %616 }
 0x32d   :  { %449 = vst [vmem:[#allocation11] sm:$0xff] %v617_v14 }
 0x32e   :  { %729 = shalt.err (!%p726_p1)
}
 0x32f   :  { %459 = dma.vmem_to_hbm [thread:$0]  %s457_s4, 128, %s872_s5, [#allocation4]  }
 0x330   :  { %744 = dma.done.wait [#allocation4], 128  }
 0x331   :  { %745 = vsyncadd [#allocation4], 4294967168 }
 0x332   :  { %463 = vsyncpa [#allocation3], 1 }
 0x333   :  { %464 = vsyncpa [#allocation6], 1 }
 0x334   :  { %465 = vsyncpa [#allocation9], 1 }
 0x335   :  { %466 = vsyncpa [#allocation4], 1 }

</bundles_post_ra>
